<compile_context>
chip_gen: v7x
topology: tpu7x:2x2x1
jax: 0.10.0
libtpu: 0.0.40
codegen_flags: <defaults>
</compile_context>

<pallas_src>
import jax
import jax.numpy as jnp
from jax import lax
from jax.experimental import pallas as pl
from jax.experimental.pallas import tpu as pltpu


def _round_up(x, m):
    return ((x + m - 1) // m) * m


def actor_kernel(ma_ref, x_ref, w1_ref, b1_ref, w2_ref, b2_ref, w3_ref, b3_ref,
                 ot_ref):
    """Activations are [features, batch_tile]; batch rides the lane axis."""
    max_action = ma_ref[0, 0]

    x = x_ref[...]                                              # f32 [TB, S]

    # Layer 1: contract S of [H1, S] with S of [TB, S] -> [H1, TB]
    h1 = lax.dot_general(w1_ref[...], x,
                         dimension_numbers=(((1,), (1,)), ((), ())),
                         preferred_element_type=jnp.float32)
    h1 = jnp.maximum(h1 + b1_ref[...], 0.0)

    # Layer 2: [H2, H1] @ [H1, TB] -> [H2, TB]
    h2 = jnp.dot(w2_ref[...], h1, preferred_element_type=jnp.float32)
    h2 = jnp.maximum(h2 + b2_ref[...], 0.0)

    # Layer 3: [A, H2] @ [H2, TB] -> [A, TB], then max_action * tanh
    h3 = jnp.dot(w3_ref[...], h2, preferred_element_type=jnp.float32)
    h3 = h3 + b3_ref[...]
    ot_ref[...] = (max_action * jnp.tanh(h3)).astype(ot_ref.dtype)


def _actor_forward_xla(x, params, max_action):
    """Plain-JAX path (for tiny batches where kernel launch overhead dominates)."""
    w1, b1, w2, b2, w3, b3 = params
    h = jnp.maximum(jnp.dot(x, w1) + b1, 0.0)
    h = jnp.maximum(jnp.dot(h, w2) + b2, 0.0)
    return max_action * jnp.tanh(jnp.dot(h, w3) + b3)


def actor_forward(x, params, max_action, *, min_pallas_batch=0):
    """x: [B, state_dim] float32. Returns [B, action_dim] float32."""
    w1, b1, w2, b2, w3, b3 = params            # w: [in, out], b: [1, out]
    B, S = x.shape
    H1 = w1.shape[1]
    H2 = w2.shape[1]
    A = w3.shape[1]

    if B < min_pallas_batch:                   # optional small-batch fallback
        return _actor_forward_xla(x, params, max_action)

    # Batch tile: large (amortizes ~0.35 us/grid-step overhead), multiple of
    # 128 (lane-dense stores), capped so (a) the grid keeps >= 2 steps when
    # the batch allows it (v7x megacore sharding) and (b) the f32 x block
    # (lane-padded 16 -> 128 => TB*128*4 bytes/buffer) stays well inside the
    # 16 MiB scoped-VMEM default of v5e when double-buffered.
    TB_MAX = 8192
    TB = max(128, min(TB_MAX, _round_up(pl.cdiv(B, 2), 128)))
    Bp = _round_up(B, TB)
    grid = (Bp // TB,)

    xp = x.astype(jnp.float32)
    if Bp != B:
        xp = jnp.pad(xp, ((0, Bp - B), (0, 0)))   # tail pad only when needed

    # Small one-time weight/bias reshapes (tiny; stay VMEM-resident per step).
    w1t = w1.T.astype(jnp.float32)             # [H1, S]
    w2t = w2.T.astype(jnp.float32)             # [H2, H1]
    w3t = w3.T.astype(jnp.float32)             # [A,  H2]
    b1t = b1.reshape(H1, 1).astype(jnp.float32)
    b2t = b2.reshape(H2, 1).astype(jnp.float32)
    b3t = b3.reshape(A, 1).astype(jnp.float32)
    ma = jnp.full((1, 1), max_action, jnp.float32)   # SMEM scalar, no recompile

    flops = 2 * Bp * (S * H1 + H1 * H2 + H2 * A)
    bytes_accessed = (Bp * S * 4 + (H1 * S + H2 * H1 + A * H2) * 4
                      + (H1 + H2 + A) * 4 + A * Bp * 4 + 4)

    resident = lambda i: (0, 0)                # weights/biases: no re-DMA per step
    out_t = pl.pallas_call(
        actor_kernel,
        out_shape=jax.ShapeDtypeStruct((A, Bp), jnp.float32),
        grid=grid,
        in_specs=[
            pl.BlockSpec(memory_space=pltpu.MemorySpace.SMEM),   # max_action
            pl.BlockSpec((TB, S), lambda i: (i, 0)),             # x batch tile
            pl.BlockSpec((H1, S), resident),
            pl.BlockSpec((H1, 1), resident),
            pl.BlockSpec((H2, H1), resident),
            pl.BlockSpec((H2, 1), resident),
            pl.BlockSpec((A, H2), resident),
            pl.BlockSpec((A, 1), resident),
        ],
        out_specs=pl.BlockSpec((A, TB), lambda i: (0, i)),
        compiler_params=pltpu.CompilerParams(
            dimension_semantics=("parallel",)),                  # megacore on v7x
        cost_estimate=pl.CostEstimate(
            flops=flops, transcendentals=Bp * A, bytes_accessed=bytes_accessed),
    )(ma, xp, w1t, b1t, w2t, b2t, w3t, b3t)

    return out_t[:, :B].T                      # back to [B, action_dim]


def init_actor_params(key, state_dim, action_dim):
    """Deterministic init mirroring nn.Linear default (uniform +/-1/sqrt(fan_in)).

    Weights stored as [in_features, out_features]; biases as [1, out_features].
    """
    def linear(key, fan_in, fan_out):
        kw, kb = jax.random.split(key)
        bound = 1.0 / jnp.sqrt(fan_in)
        w = jax.random.uniform(kw, (fan_in, fan_out), jnp.float32, -bound, bound)
        b = jax.random.uniform(kb, (1, fan_out), jnp.float32, -bound, bound)
        return w, b

    k1, k2, k3 = jax.random.split(key, 3)
    w1, b1 = linear(k1, state_dim, 32)
    w2, b2 = linear(k2, 32, 16)
    w3, b3 = linear(k3, 16, action_dim)
    return (w1, b1, w2, b2, w3, b3)


def actor_forward_ref(x, params, max_action):
    """Pure-JAX f32 reference (matches PyTorch Actor numerics)."""
    w1, b1, w2, b2, w3, b3 = params
    h = jnp.maximum(jnp.dot(x, w1, preferred_element_type=jnp.float32) + b1, 0.0)
    h = jnp.maximum(jnp.dot(h, w2, preferred_element_type=jnp.float32) + b2, 0.0)
    h = jnp.dot(h, w3, preferred_element_type=jnp.float32) + b3
    return max_action * jnp.tanh(h)


if __name__ == "__main__":
    key = jax.random.PRNGKey(0)
    k_params, k_x = jax.random.split(key)

    batch = 8
    state_dim = 16
    action_dim = 4
    max_action = 2.0

    params = init_actor_params(k_params, state_dim, action_dim)
    x = jax.random.normal(k_x, (batch, state_dim), jnp.float32)

    fwd = jax.jit(actor_forward)
    out = fwd(x, params, max_action)
    out = jax.block_until_ready(out)

    ref = actor_forward_ref(x, params, max_action)
    assert out.shape == (batch, action_dim)
    assert jnp.allclose(out, ref, atol=1e-4, rtol=1e-4), "mismatch vs JAX reference"

    print("KERNEL_OK")
</pallas_src>

<mosaic_0001>
module attributes {stable_mosaic.version = 11 : i64} {
  func.func @actor_kernel(%arg0: i32, %arg1: memref<1x1xf32, #tpu.memory_space<smem>>, %arg2: memref<128x16xf32, #tpu.memory_space<vmem>>, %arg3: memref<32x16xf32, #tpu.memory_space<vmem>>, %arg4: memref<32x1xf32, #tpu.memory_space<vmem>>, %arg5: memref<16x32xf32, #tpu.memory_space<vmem>>, %arg6: memref<16x1xf32, #tpu.memory_space<vmem>>, %arg7: memref<4x16xf32, #tpu.memory_space<vmem>>, %arg8: memref<4x1xf32, #tpu.memory_space<vmem>>, %arg9: memref<4x128xf32, #tpu.memory_space<vmem>>) attributes {dimension_semantics = [#tpu.dimension_semantics<parallel>], iteration_bounds = array<i64: 1>, scalar_prefetch = 0 : i64, scratch_operands = 0 : i64, tpu.core_type = #tpu.core_type<tc>, window_params = [{transform_indices = @transform_0, window_bounds = array<i64: 1, 1>}, {transform_indices = @transform_1, window_bounds = array<i64: 128, 16>}, {pipeline_mode = #tpu.pipeline_mode<synchronous>, transform_indices = @transform_2, window_bounds = array<i64: 32, 16>}, {pipeline_mode = #tpu.pipeline_mode<synchronous>, transform_indices = @transform_3, window_bounds = array<i64: 32, 1>}, {pipeline_mode = #tpu.pipeline_mode<synchronous>, transform_indices = @transform_4, window_bounds = array<i64: 16, 32>}, {pipeline_mode = #tpu.pipeline_mode<synchronous>, transform_indices = @transform_5, window_bounds = array<i64: 16, 1>}, {pipeline_mode = #tpu.pipeline_mode<synchronous>, transform_indices = @transform_6, window_bounds = array<i64: 4, 16>}, {pipeline_mode = #tpu.pipeline_mode<synchronous>, transform_indices = @transform_7, window_bounds = array<i64: 4, 1>}, {transform_indices = @transform_8, window_bounds = array<i64: 4, 128>}]} {
    %c0 = arith.constant 0 : index
    %c0_0 = arith.constant 0 : index
    %0 = memref.load %arg1[%c0, %c0_0] : memref<1x1xf32, #tpu.memory_space<smem>>
    %c0_1 = arith.constant 0 : index
    %c0_2 = arith.constant 0 : index
    %1 = vector.load %arg2[%c0_1, %c0_2] : memref<128x16xf32, #tpu.memory_space<vmem>>, vector<128x16xf32>
    %c0_3 = arith.constant 0 : index
    %c0_4 = arith.constant 0 : index
    %2 = vector.load %arg3[%c0_3, %c0_4] : memref<32x16xf32, #tpu.memory_space<vmem>>, vector<32x16xf32>
    %cst = arith.constant dense<0.000000e+00> : vector<32x128xf32>
    %3 = tpu.matmul %2, %1, %cst {dimension_numbers = #tpu.dot_dimension_numbers<[1], [1], [0], [0], [0, 0, 1, 0], [], []>} : vector<32x16xf32>, vector<128x16xf32>, vector<32x128xf32> -> vector<32x128xf32>
    %c0_5 = arith.constant 0 : index
    %c0_6 = arith.constant 0 : index
    %4 = vector.load %arg4[%c0_5, %c0_6] : memref<32x1xf32, #tpu.memory_space<vmem>>, vector<32x1xf32>
    %5 = vector.broadcast %4 : vector<32x1xf32> to vector<32x128xf32>
    %6 = arith.addf %3, %5 : vector<32x128xf32>
    %cst_7 = arith.constant 0.000000e+00 : f32
    %7 = vector.broadcast %cst_7 : f32 to vector<32x128xf32>
    %8 = arith.maximumf %6, %7 : vector<32x128xf32>
    %c0_8 = arith.constant 0 : index
    %c0_9 = arith.constant 0 : index
    %9 = vector.load %arg5[%c0_8, %c0_9] : memref<16x32xf32, #tpu.memory_space<vmem>>, vector<16x32xf32>
    %cst_10 = arith.constant dense<0.000000e+00> : vector<16x128xf32>
    %10 = tpu.matmul %9, %8, %cst_10 {dimension_numbers = #tpu.dot_dimension_numbers<[1], [0], [0], [1], [0, 0, 1, 1], [], []>} : vector<16x32xf32>, vector<32x128xf32>, vector<16x128xf32> -> vector<16x128xf32>
    %c0_11 = arith.constant 0 : index
    %c0_12 = arith.constant 0 : index
    %11 = vector.load %arg6[%c0_11, %c0_12] : memref<16x1xf32, #tpu.memory_space<vmem>>, vector<16x1xf32>
    %12 = vector.broadcast %11 : vector<16x1xf32> to vector<16x128xf32>
    %13 = arith.addf %10, %12 : vector<16x128xf32>
    %cst_13 = arith.constant 0.000000e+00 : f32
    %14 = vector.broadcast %cst_13 : f32 to vector<16x128xf32>
    %15 = arith.maximumf %13, %14 : vector<16x128xf32>
    %c0_14 = arith.constant 0 : index
    %c0_15 = arith.constant 0 : index
    %16 = vector.load %arg7[%c0_14, %c0_15] : memref<4x16xf32, #tpu.memory_space<vmem>>, vector<4x16xf32>
    %cst_16 = arith.constant dense<0.000000e+00> : vector<4x128xf32>
    %17 = tpu.matmul %16, %15, %cst_16 {dimension_numbers = #tpu.dot_dimension_numbers<[1], [0], [0], [1], [0, 0, 1, 1], [], []>} : vector<4x16xf32>, vector<16x128xf32>, vector<4x128xf32> -> vector<4x128xf32>
    %c0_17 = arith.constant 0 : index
    %c0_18 = arith.constant 0 : index
    %18 = vector.load %arg8[%c0_17, %c0_18] : memref<4x1xf32, #tpu.memory_space<vmem>>, vector<4x1xf32>
    %19 = vector.broadcast %18 : vector<4x1xf32> to vector<4x128xf32>
    %20 = arith.addf %17, %19 : vector<4x128xf32>
    %21 = math.tanh %20 : vector<4x128xf32>
    %22 = vector.broadcast %0 : f32 to vector<4x128xf32>
    %23 = arith.mulf %22, %21 : vector<4x128xf32>
    %c0_19 = arith.constant 0 : index
    %c0_20 = arith.constant 0 : index
    %24 = vector.load %arg9[%c0_19, %c0_20] : memref<4x128xf32, #tpu.memory_space<vmem>>, vector<4x128xf32>
    tpu.vector_store %arg9[%c0_19, %c0_20], %23 {strides = array<i32>} : memref<4x128xf32, #tpu.memory_space<vmem>>, vector<4x128xf32>,
    return
  }
  func.func @transform_0(%arg0: i32) -> (i32, i32) {
    %c0_i32 = arith.constant 0 : i32
    %c0_i32_0 = arith.constant 0 : i32
    %c0_i32_1 = arith.constant 0 : i32
    return %c0_i32, %c0_i32_0 : i32, i32
  }
  func.func @transform_1(%arg0: i32) -> (i32, i32) {
    %c0_i32 = arith.constant 0 : i32
    %c0_i32_0 = arith.constant 0 : i32
    return %arg0, %c0_i32 : i32, i32
  }
  func.func @transform_2(%arg0: i32) -> (i32, i32) {
    %c0_i32 = arith.constant 0 : i32
    %c0_i32_0 = arith.constant 0 : i32
    %c0_i32_1 = arith.constant 0 : i32
    return %c0_i32, %c0_i32_0 : i32, i32
  }
  func.func @transform_3(%arg0: i32) -> (i32, i32) {
    %c0_i32 = arith.constant 0 : i32
    %c0_i32_0 = arith.constant 0 : i32
    %c0_i32_1 = arith.constant 0 : i32
    return %c0_i32, %c0_i32_0 : i32, i32
  }
  func.func @transform_4(%arg0: i32) -> (i32, i32) {
    %c0_i32 = arith.constant 0 : i32
    %c0_i32_0 = arith.constant 0 : i32
    %c0_i32_1 = arith.constant 0 : i32
    return %c0_i32, %c0_i32_0 : i32, i32
  }
  func.func @transform_5(%arg0: i32) -> (i32, i32) {
    %c0_i32 = arith.constant 0 : i32
    %c0_i32_0 = arith.constant 0 : i32
    %c0_i32_1 = arith.constant 0 : i32
    return %c0_i32, %c0_i32_0 : i32, i32
  }
  func.func @transform_6(%arg0: i32) -> (i32, i32) {
    %c0_i32 = arith.constant 0 : i32
    %c0_i32_0 = arith.constant 0 : i32
    %c0_i32_1 = arith.constant 0 : i32
    return %c0_i32, %c0_i32_0 : i32, i32
  }
  func.func @transform_7(%arg0: i32) -> (i32, i32) {
    %c0_i32 = arith.constant 0 : i32
    %c0_i32_0 = arith.constant 0 : i32
    %c0_i32_1 = arith.constant 0 : i32
    return %c0_i32, %c0_i32_0 : i32, i32
  }
  func.func @transform_8(%arg0: i32) -> (i32, i32) {
    %c0_i32 = arith.constant 0 : i32
    %c0_i32_0 = arith.constant 0 : i32
    return %c0_i32, %arg0 : i32, i32
  }
}

</mosaic_0001>

<bundles_post_ra>
// kernel: actor_forward.1
= control target key start
LH: loop header
LB: loop body
LE: loop exit
PB: predicated region body
PF: predicated region fallthrough
CT: control target
= control target key end

     0   :  { %vm75_vm0 = vcmask 130048   ;;  %v586_v3 = vmov 0   ;;  %vm239_vm2 = vcmask 261120   ;;  %v587_v57 = vmov 0.0|0.0   ;;  %s776_s1 = inlined_call_operand.vmem [shape: f32[128,16], index: 1, kind: input, shape index: {}]   ;;  %s777_s2 = inlined_call_operand.vmem [shape: f32[32,16], index: 2, kind: input, shape index: {}]   ;;  %s778_s3 = inlined_call_operand.vmem [shape: f32[32,1], index: 3, kind: input, shape index: {}]   ;;  %s779_s5 = inlined_call_operand.vmem [shape: f32[16,1], index: 5, kind: input, shape index: {}]   ;;  %s780_s7 = inlined_call_operand.vmem [shape: f32[4,1], index: 7, kind: input, shape index: {}]   ;;  %s781_s4 = inlined_call_operand.vmem [shape: f32[16,32], index: 4, kind: input, shape index: {}]   ;;  %s782_s6 = inlined_call_operand.vmem [shape: f32[4,16], index: 6, kind: input, shape index: {}]   ;;  %s783_s0 = inlined_call_operand.<no memory space> [shape: f32[1,1], index: 0, kind: input, shape index: {}]   ;;  %s784_s8 = inlined_call_operand.vmem [shape: f32[4,128], index: 8, kind: output, shape index: {}]  }
   0x1   :  { %v31_v0 = vld [vmem:[%s776_s1] sm:$0xff]  ;;  %v32_v1 = vld [vmem:[%s776_s1 + $0x8] sm:$0xff]  ;;  %vm643_vm1 = vmpackc.low %vm75_vm0, %vm75_vm0  ;;  %582 = vset.pattern.permute.xlu0 %v586_v3  ;;  %583 = vset.pattern.permute.xlu1 %v586_v3  ;;  %vm588_vm3 = vmmov 0   ;;  %v589_v58 = vmov 0.0  }
   0x2   :  { %v519_v4 = vpack.c.bf16 %v32_v1, %v31_v0  ;;  %v33_v5 = vld [vmem:[%s776_s1 + $0x10] sm:$0xff]  ;;  %v34_v6 = vld [vmem:[%s776_s1 + $0x18] sm:$0xff]  ;;  %v47_v8 = vld [vmem:[%s777_s2] sm:$0xff] }
   0x3   :  { %v525_v7 = vpack.c.bf16 %v34_v6, %v33_v5  ;;  %v35_v9 = vld [vmem:[%s776_s1 + $0x20] sm:$0xff]  ;;  %v36_v10 = vld [vmem:[%s776_s1 + $0x28] sm:$0xff]  ;;  %495 = vmatprep.mubr.msk.f32.mxu0 %vm75_vm0, %v47_v8  ;;  %v53_v12 = vld [vmem:[%s778_s3 + $0x10] sm:$0xff] }
   0x4   :  { %521 = vmatprep.subr.msk.bf16.mxu0 %vm643_vm1, %v519_v4  ;;  %v51_v11 = vld [vmem:[%s778_s3] sm:$0xff]  ;;  %67 = vperm.xlu1 %583, %v53_v12   ;;  %v531_v13 = vpack.c.bf16 %v36_v10, %v35_v9  ;;  %v52_v14 = vld [vmem:[%s778_s3 + $0x8] sm:$0xff]  ;;  %v54_v15 = vld [vmem:[%s778_s3 + $0x18] sm:$0xff]  ;;  %v404_v9 = vstv %s783_s0 }
   0x5   :  { %524 = vmatpush3.bf16.xpose.msk.msra.mxu0 %vm643_vm1, %v519_v4  ;;  %57 = vperm.xlu0 %582, %v51_v11   ;;  %v227_v16 = vld [vmem:[%s779_s5] sm:$0xff]  ;;  %v37_v17 = vld [vmem:[%s776_s1 + $0x30] sm:$0xff]  ;;  %v38_v18 = vld [vmem:[%s776_s1 + $0x38] sm:$0xff] }
   0x6   :  { %527 = vmatprep.subr.msk.bf16.mxu0 %vm643_vm1, %v525_v7  ;;  %v228_v19 = vld [vmem:[%s779_s5 + $0x8] sm:$0xff]  ;;  %v537_v20 = vpack.c.bf16 %v38_v18, %v37_v17  ;;  %v324_v21 = vld [vmem:[%s780_s7] sm:$0xf]  ;;  %v41_v25 = vld [vmem:[%s776_s1 + $0x50] sm:$0xff] }
   0x7   :  { %v39_v22 = vld [vmem:[%s776_s1 + $0x40] sm:$0xff]  ;;  %v40_v23 = vld [vmem:[%s776_s1 + $0x48] sm:$0xff]  ;;  %v42_v26 = vld [vmem:[%s776_s1 + $0x58] sm:$0xff] }
   0x8   :  { %72 = vperm.xlu1 %583, %v54_v15   ;;  %v543_v24 = vpack.c.bf16 %v40_v23, %v39_v22  ;;  %v549_v27 = vpack.c.bf16 %v42_v26, %v41_v25  ;;  %v43_v28 = vld [vmem:[%s776_s1 + $0x60] sm:$0xff]  ;;  %v44_v29 = vld [vmem:[%s776_s1 + $0x68] sm:$0xff]  ;;  %v45_v31 = vld [vmem:[%s776_s1 + $0x70] sm:$0xff] }
   0x9   :  { %62 = vperm.xlu0 %582, %v52_v14   ;;  %v555_v30 = vpack.c.bf16 %v44_v29, %v43_v28  ;;  %v46_v32 = vld [vmem:[%s776_s1 + $0x78] sm:$0xff]  ;;  %v48_v34 = vld [vmem:[%s777_s2 + $0x8] sm:$0xff]  ;;  %v49_v35 = vld [vmem:[%s777_s2 + $0x10] sm:$0xff] }
   0xa   :  { %v561_v33 = vpack.c.bf16 %v46_v32, %v45_v31  ;;  %v50_v36 = vld [vmem:[%s777_s2 + $0x18] sm:$0xff]  ;;  %v225_v37 = vld [vmem:[%s781_s4] sm:$0xff]  ;;  %v226_v56 = vld [vmem:[%s781_s4 + $0x8] sm:$0xff] }
   0xb   :  { %509 = vmatprep.mubr.msk.f32.mxu1 %vm239_vm2, %v225_v37  ;;  %v323_v4 = vld [vmem:[%s782_s6] sm:$0xf] }
   0xc   :  { %236 = vperm.xlu1 %583, %v228_v19  }
   0xd   :  { %530 = vmatpush3.bf16.xpose.msk.msra.mxu0 %vm643_vm1, %v525_v7  ;;  %231 = vperm.xlu0 %582, %v227_v16  }
   0xe   :  { %533 = vmatprep.subr.msk.bf16.mxu0 %vm643_vm1, %v531_v13 }
  0x11   :  { %327 = vperm.xlu0 %582, %v324_v21  }
  0x15   :  { %536 = vmatpush3.bf16.xpose.msk.msra.mxu0 %vm643_vm1, %v531_v13 }
  0x16   :  { %539 = vmatprep.subr.msk.bf16.mxu0 %vm643_vm1, %v537_v20 }
  0x1d   :  { %542 = vmatpush3.bf16.xpose.msk.msra.mxu0 %vm643_vm1, %v537_v20 }
  0x1e   :  { %545 = vmatprep.subr.msk.bf16.mxu0 %vm643_vm1, %v543_v24 }
  0x25   :  { %548 = vmatpush3.bf16.xpose.msk.msra.mxu0 %vm643_vm1, %v543_v24 }
  0x26   :  { %551 = vmatprep.subr.msk.bf16.mxu0 %vm643_vm1, %v549_v27 }
  0x2d   :  { %554 = vmatpush3.bf16.xpose.msk.msra.mxu0 %vm643_vm1, %v549_v27 }
  0x2e   :  { %557 = vmatprep.subr.msk.bf16.mxu0 %vm643_vm1, %v555_v30 }
  0x35   :  { %560 = vmatpush3.bf16.xpose.msk.msra.mxu0 %vm643_vm1, %v555_v30 }
  0x36   :  { %563 = vmatprep.subr.msk.bf16.mxu0 %vm643_vm1, %v561_v33 }
  0x3d   :  { %566 = vmatpush3.bf16.xpose.msk.msra.mxu0 %vm643_vm1, %v561_v33 }
  0x44   :  { %496 = vmatmul.mubr.msk.f32.vlgmr.msra.gmra.mrb[0].mxu0 %vm75_vm0, %v48_v34 }
  0x45   :  { %498 = vmatprep.mubr.msk.f32.mxu0 %vm75_vm0, %v49_v35 }
  0x48   :  { %499 = vmatmul.mubr.msk.f32.gmra.mrb[2].mxu0 %vm75_vm0, %v50_v36 }
  0x83   :  { %v68_v39 = vpop.permute.xlu1 %67 }
  0x84   :  { %v58_v38 = vpop.permute.xlu0 %57 }
  0x87   :  { %v73_v46 = vpop.permute.xlu1 %72 }
  0x88   :  { %v63_v40 = vpop.permute.xlu0 %62 }
  0x8b   :  { %v237_v59 = vpop.permute.xlu1 %236 }
  0x8c   :  { %v232_v61 = vpop.permute.xlu0 %231 }
  0x90   :  { %v328_v5 = vpop.permute.xlu0 %327 }
 0x117   :  { %v497_v41 = vpop.f32.mrb[0].mxu0 }
 0x118   :  { %v208_v42 = vadd.f32 %v497_v41, %v63_v40  ;;  %v202_v43 = vpop.f32.mrb[1].mxu0 }
 0x119   :  { %v203_v44 = vadd.f32 %v202_v43, %v58_v38 }
 0x11a   :  { %v222_v45 = vmax.f32 %v208_v42, 0.0 }
 0x11b   :  { %v221_v47 = vmax.f32 %v203_v44, 0.0  ;;  %v500_v48 = vpop.f32.mrb[2].mxu0 }
 0x11c   :  { %v218_v49 = vadd.f32 %v500_v48, %v73_v46  ;;  %v212_v50 = vpop.f32.mrb[3].mxu0 }
 0x11d   :  { %v213_v51 = vadd.f32 %v212_v50, %v68_v39  ;;  %v567_v52 = vpack.c.bf16 %v222_v45, %v221_v47 }
 0x11e   :  { %v224_v53 = vmax.f32 %v218_v49, 0.0 }
 0x11f   :  { %v223_v54 = vmax.f32 %v213_v51, 0.0  ;;  %568 = vmatprep.subr.bf16.mxu1 %v567_v52 }
 0x120   :  { %570 = vmatpush3.bf16.msra.mxu1 %v567_v52 }
 0x121   :  { %v571_v55 = vpack.c.bf16 %v224_v53, %v223_v54 }
 0x123   :  { %572 = vmatprep.subr.bf16.mxu1 %v571_v55 }
 0x124   :  { %574 = vmatpush3.bf16.msra.mxu1 %v571_v55 }
 0x125   :  { %575 = vmatprep.subr.bf16.mxu1 %v587_v57 }
 0x127   :  { %510 = vmatmul.mubr.msk.f32.vlgmr.msra.gmra.mrb[0].mxu1 %vm239_vm2, %v226_v56 }
 0x128   :  { %516 = vmatprep.mubr.msk.f32.mxu1 %vm588_vm3, %v589_v58 }
 0x1fa   :  { %v511_v60 = vpop.f32.mrb[0].mxu1 }
 0x1fb   :  { %v318_v62 = vadd.f32 %v511_v60, %v237_v59  ;;  %v312_v63 = vpop.f32.mrb[1].mxu1 }
 0x1fc   :  { %v313_v0 = vadd.f32 %v312_v63, %v232_v61 }
 0x1fd   :  { %v322_v1 = vmax.f32 %v318_v62, 0.0 }
 0x1fe   :  { %v321_v2 = vmax.f32 %v313_v0, 0.0 }
 0x200   :  { %v576_v3 = vpack.c.bf16 %v322_v1, %v321_v2 }
 0x202   :  { %577 = vmatpush3.bf16.msra.mxu1 %v576_v3 }
 0x205   :  { %517 = vmatmul.mubr.msk.f32.vlgmr.msra.gmra.mrb[2].mxu1 %vm75_vm0, %v323_v4 }
 0x2d8   :  { %v399_v6 = vpop.f32.mrb[2].mxu1 }
 0x2d9   :  { %v400_v7 = vadd.f32 %v399_v6, %v328_v5  ;;  %v518_v8 = vpop.f32.mrb[3].mxu1 }
 0x2db   :  { %584 = vtanh.f32 %v400_v7 }
 0x2e5   :  { %v585_v10 = vpop.eup %584 }
 0x2e6   :  { %v405_v11 = vmul.f32 %v585_v10, %v404_v9 }
 0x2e8   :  { %406 = vst [vmem:[%s784_s8] sm:$0xf] %v405_v11 }

</bundles_post_ra>
